<compile_context>
chip_gen: v6e
topology: v6e:2x2x1
jax: 0.10.0
libtpu: 0.0.40
codegen_flags: <defaults>
</compile_context>

<pallas_src>
import functools

import jax
import jax.numpy as jnp
from jax.experimental import pallas as pl
from jax.experimental.pallas import tpu as pltpu


def _round_up(n, m):
    return ((n + m - 1) // m) * m


def _mlp_kernel(x_ref, w1_ref, b1_ref, w2_ref, b2_ref, o_ref):
    # x: [TB, F], w1: [F, Hp], b1: [1, Hp], w2: [Hp, D], b2: [1, D]
    h = jnp.dot(x_ref[...], w1_ref[...], preferred_element_type=jnp.float32)
    h = jnp.maximum(h + b1_ref[...], 0.0)                       # ReLU
    out = jnp.dot(h, w2_ref[...], preferred_element_type=jnp.float32)
    o_ref[...] = (out + b2_ref[...]).astype(o_ref.dtype)


def _pick_batch_tile(B, F, Hp, D, budget_bytes=12 * 1024 * 1024, cap=4096):
    """Batch tile: biggest multiple of 8 (capped) that fits a conservative VMEM
    budget; at least 2 grid steps for larger batches (v7x dual-TC sharding)."""
    if B < 8:
        return B  # block second-to-last dim == full array dim (legal)
    tb = min(_round_up(B, 8), cap)
    if B >= 16:
        # Ensure >= 2 grid steps so the "parallel" axis can use both TCs (v7x).
        tb = min(tb, _round_up(pl.cdiv(B, 2), 8))

    def fits(t):
        # double-buffered x/out tiles + f32 intermediates (h, post-ReLU)
        return (2 * t * (F + D) + 2 * t * Hp) * 4 <= budget_bytes

    while tb > 8 and not fits(tb):
        tb = _round_up(tb // 2, 8)
    return max(tb, 8)


@functools.partial(jax.jit, static_argnames=("lambda_",))
def domain_classifier_forward(x, w1, b1, w2, b2, lambda_=1.0):
    """Forward of DomainClassifier.

    x:  [B, F] float32
    w1: [F, 100], b1: [100]  (first Linear, stored transposed vs torch)
    w2: [100, D], b2: [D]    (second Linear, stored transposed vs torch)
    lambda_ only affects the backward of grad_reverse; forward is identity.
    """
    B, F = x.shape
    H = w1.shape[1]
    D = w2.shape[1]

    # Lane-align only the hidden dim (zero padding -> numerically exact).
    Hp = _round_up(H, 128)
    w1_p = jnp.zeros((F, Hp), w1.dtype).at[:, :H].set(w1)
    b1_p = jnp.zeros((1, Hp), b1.dtype).at[0, :H].set(b1)
    w2_p = jnp.zeros((Hp, D), w2.dtype).at[:H, :].set(w2)
    b2_p = b2.reshape(1, D)

    TB = _pick_batch_tile(B, F, Hp, D)
    grid = (pl.cdiv(B, TB),)  # partial trailing block handled by Pallas masking

    return pl.pallas_call(
        _mlp_kernel,
        out_shape=jax.ShapeDtypeStruct((B, D), x.dtype),
        grid=grid,
        in_specs=[
            pl.BlockSpec((TB, F), lambda i: (i, 0)),   # x: tiled over batch
            pl.BlockSpec((F, Hp), lambda i: (0, 0)),   # weights stay resident
            pl.BlockSpec((1, Hp), lambda i: (0, 0)),
            pl.BlockSpec((Hp, D), lambda i: (0, 0)),
            pl.BlockSpec((1, D), lambda i: (0, 0)),
        ],
        out_specs=pl.BlockSpec((TB, D), lambda i: (i, 0)),
        compiler_params=pltpu.CompilerParams(
            dimension_semantics=("parallel",)),
    )(x, w1_p, b1_p, w2_p, b2_p)


if __name__ == "__main__":
    # Small, deterministic shapes consistent with the module.
    batch = 8
    feature_dim = 32
    hidden = 100          # fixed by the module definition
    num_domains = 4

    key = jax.random.PRNGKey(0)
    kx, k1, k2, k3, k4 = jax.random.split(key, 5)

    x = jax.random.normal(kx, (batch, feature_dim), dtype=jnp.float32)
    # PyTorch param shapes are W1 [100, F], W2 [D, 100]; stored transposed here
    # so the kernel does row-major [B,F]@[F,H] / [B,H]@[H,D] matmuls.
    w1 = jax.random.normal(k1, (feature_dim, hidden), dtype=jnp.float32) * 0.1
    b1 = jax.random.normal(k2, (hidden,), dtype=jnp.float32) * 0.1
    w2 = jax.random.normal(k3, (hidden, num_domains), dtype=jnp.float32) * 0.1
    b2 = jax.random.normal(k4, (num_domains,), dtype=jnp.float32) * 0.1

    out = domain_classifier_forward(x, w1, b1, w2, b2, lambda_=1.0)
    out = jax.block_until_ready(out)

    # Reference check in plain JAX (forward of grad_reverse is identity).
    ref = jnp.maximum(x @ w1 + b1, 0.0) @ w2 + b2
    assert out.shape == (batch, num_domains)
    assert jnp.allclose(out, ref, atol=1e-5, rtol=1e-5)

    print("KERNEL_OK")
</pallas_src>

<mosaic_0001>
module attributes {stable_mosaic.version = 11 : i64} {
  func.func @_mlp_kernel(%arg0: i32, %arg1: memref<8x32xf32, #tpu.memory_space<vmem>>, %arg2: memref<32x128xf32, #tpu.memory_space<vmem>>, %arg3: memref<1x128xf32, #tpu.memory_space<vmem>>, %arg4: memref<128x4xf32, #tpu.memory_space<vmem>>, %arg5: memref<1x4xf32, #tpu.memory_space<vmem>>, %arg6: memref<8x4xf32, #tpu.memory_space<vmem>>) attributes {dimension_semantics = [#tpu.dimension_semantics<parallel>], iteration_bounds = array<i64: 1>, scalar_prefetch = 0 : i64, scratch_operands = 0 : i64, tpu.core_type = #tpu.core_type<tc>, window_params = [{transform_indices = @transform_0, window_bounds = array<i64: 8, 32>}, {pipeline_mode = #tpu.pipeline_mode<synchronous>, transform_indices = @transform_1, window_bounds = array<i64: 32, 128>}, {pipeline_mode = #tpu.pipeline_mode<synchronous>, transform_indices = @transform_2, window_bounds = array<i64: 1, 128>}, {pipeline_mode = #tpu.pipeline_mode<synchronous>, transform_indices = @transform_3, window_bounds = array<i64: 128, 4>}, {pipeline_mode = #tpu.pipeline_mode<synchronous>, transform_indices = @transform_4, window_bounds = array<i64: 1, 4>}, {transform_indices = @transform_5, window_bounds = array<i64: 8, 4>}]} {
    %c0 = arith.constant 0 : index
    %c0_0 = arith.constant 0 : index
    %0 = vector.load %arg1[%c0, %c0_0] : memref<8x32xf32, #tpu.memory_space<vmem>>, vector<8x32xf32>
    %c0_1 = arith.constant 0 : index
    %c0_2 = arith.constant 0 : index
    %1 = vector.load %arg2[%c0_1, %c0_2] : memref<32x128xf32, #tpu.memory_space<vmem>>, vector<32x128xf32>
    %cst = arith.constant dense<0.000000e+00> : vector<8x128xf32>
    %2 = tpu.matmul %0, %1, %cst {dimension_numbers = #tpu.dot_dimension_numbers<[1], [0], [0], [1], [0, 0, 1, 1], [], []>} : vector<8x32xf32>, vector<32x128xf32>, vector<8x128xf32> -> vector<8x128xf32>
    %c0_3 = arith.constant 0 : index
    %c0_4 = arith.constant 0 : index
    %3 = vector.load %arg3[%c0_3, %c0_4] : memref<1x128xf32, #tpu.memory_space<vmem>>, vector<1x128xf32>
    %4 = vector.broadcast %3 : vector<1x128xf32> to vector<8x128xf32>
    %5 = arith.addf %2, %4 : vector<8x128xf32>
    %cst_5 = arith.constant 0.000000e+00 : f32
    %6 = vector.broadcast %cst_5 : f32 to vector<8x128xf32>
    %7 = arith.maximumf %5, %6 : vector<8x128xf32>
    %c0_6 = arith.constant 0 : index
    %c0_7 = arith.constant 0 : index
    %8 = vector.load %arg4[%c0_6, %c0_7] : memref<128x4xf32, #tpu.memory_space<vmem>>, vector<128x4xf32>
    %cst_8 = arith.constant dense<0.000000e+00> : vector<8x4xf32>
    %9 = tpu.matmul %7, %8, %cst_8 {dimension_numbers = #tpu.dot_dimension_numbers<[1], [0], [0], [1], [0, 0, 1, 1], [], []>} : vector<8x128xf32>, vector<128x4xf32>, vector<8x4xf32> -> vector<8x4xf32>
    %c0_9 = arith.constant 0 : index
    %c0_10 = arith.constant 0 : index
    %10 = vector.load %arg5[%c0_9, %c0_10] : memref<1x4xf32, #tpu.memory_space<vmem>>, vector<1x4xf32>
    %11 = vector.broadcast %10 : vector<1x4xf32> to vector<8x4xf32>
    %12 = arith.addf %9, %11 : vector<8x4xf32>
    %c0_11 = arith.constant 0 : index
    %c0_12 = arith.constant 0 : index
    %13 = vector.load %arg6[%c0_11, %c0_12] : memref<8x4xf32, #tpu.memory_space<vmem>>, vector<8x4xf32>
    tpu.vector_store %arg6[%c0_11, %c0_12], %12 {strides = array<i32>} : memref<8x4xf32, #tpu.memory_space<vmem>>, vector<8x4xf32>,
    return
  }
  func.func @transform_0(%arg0: i32) -> (i32, i32) {
    %c0_i32 = arith.constant 0 : i32
    %c0_i32_0 = arith.constant 0 : i32
    return %arg0, %c0_i32 : i32, i32
  }
  func.func @transform_1(%arg0: i32) -> (i32, i32) {
    %c0_i32 = arith.constant 0 : i32
    %c0_i32_0 = arith.constant 0 : i32
    %c0_i32_1 = arith.constant 0 : i32
    return %c0_i32, %c0_i32_0 : i32, i32
  }
  func.func @transform_2(%arg0: i32) -> (i32, i32) {
    %c0_i32 = arith.constant 0 : i32
    %c0_i32_0 = arith.constant 0 : i32
    %c0_i32_1 = arith.constant 0 : i32
    return %c0_i32, %c0_i32_0 : i32, i32
  }
  func.func @transform_3(%arg0: i32) -> (i32, i32) {
    %c0_i32 = arith.constant 0 : i32
    %c0_i32_0 = arith.constant 0 : i32
    %c0_i32_1 = arith.constant 0 : i32
    return %c0_i32, %c0_i32_0 : i32, i32
  }
  func.func @transform_4(%arg0: i32) -> (i32, i32) {
    %c0_i32 = arith.constant 0 : i32
    %c0_i32_0 = arith.constant 0 : i32
    %c0_i32_1 = arith.constant 0 : i32
    return %c0_i32, %c0_i32_0 : i32, i32
  }
  func.func @transform_5(%arg0: i32) -> (i32, i32) {
    %c0_i32 = arith.constant 0 : i32
    %c0_i32_0 = arith.constant 0 : i32
    return %arg0, %c0_i32 : i32, i32
  }
}

</mosaic_0001>

<bundles_post_ra>
// kernel: domain_classifier_forward.1
= control target key start
LH: loop header
LB: loop body
LE: loop exit
PB: predicated region body
PF: predicated region fallthrough
CT: control target
= control target key end

     0   :  { %v279_v0 = vmov 0.0   ;;  %vm280_vm0 = vmmov 0   ;;  %vm32_vm1 = vcmask 261120   ;;  %vm200_vm2 = vcmask 31744   ;;  %s407_s1 = inlined_call_operand.vmem [shape: f32[32,128], index: 1, kind: input, shape index: {}]   ;;  %s408_s3 = inlined_call_operand.vmem [shape: f32[128,4], index: 3, kind: input, shape index: {}]   ;;  %s409_s0 = inlined_call_operand.vmem [shape: f32[8,32], index: 0, kind: input, shape index: {}]   ;;  %s410_s2 = inlined_call_operand.vmem [shape: f32[1,128], index: 2, kind: input, shape index: {}]   ;;  %s411_s4 = inlined_call_operand.vmem [shape: f32[1,4], index: 4, kind: input, shape index: {}]   ;;  %s412_s5 = inlined_call_operand.vmem [shape: f32[8,4], index: 5, kind: output, shape index: {}]  }
   0x1   :  { %231 = vmatprep.subr.mxu0 %v279_v0  ;;  %v24_v1 = vld [vmem:[%s407_s1 + $0x18] sm:$0xff]  ;;  %v23_v2 = vld [vmem:[%s407_s1 + $0x10] sm:$0xff]  ;;  %239 = vmatprep.mubr.msk.f32.mxu0 %vm280_vm0, %v279_v0  ;;  %v22_v4 = vld [vmem:[%s407_s1 + $0x8] sm:$0xff] }
   0x2   :  { %232 = vmatpush3.msra.mxu0 %v24_v1  ;;  %242 = vmatprep.subr.mxu1 %v279_v0  ;;  %v122_v3 = vld [vmem:[%s408_s3 + $0x78] sm:$0xff]  ;;  %v121_v5 = vld [vmem:[%s408_s3 + $0x70] sm:$0xff]  ;;  %v120_v6 = vld [vmem:[%s408_s3 + $0x68] sm:$0xff] }
   0x3   :  { %233 = vmatprep.subr.mxu0 %v279_v0  ;;  %243 = vmatpush3.msra.mxu1 %v122_v3  ;;  %v21_v7 = vld [vmem:[%s407_s1] sm:$0xff]  ;;  %v118_v10 = vld [vmem:[%s408_s3 + $0x58] sm:$0xff]  ;;  %v117_v11 = vld [vmem:[%s408_s3 + $0x50] sm:$0xff] }
   0x4   :  { %234 = vmatpush3.msra.mxu0 %v23_v2  ;;  %244 = vmatprep.subr.mxu1 %v279_v0  ;;  %v20_v8 = vld [vmem:[%s409_s0] sm:$0xff]  ;;  %v116_v12 = vld [vmem:[%s408_s3 + $0x48] sm:$0xff]  ;;  %v114_v14 = vld [vmem:[%s408_s3 + $0x38] sm:$0xff] }
   0x5   :  { %235 = vmatprep.subr.mxu0 %v279_v0  ;;  %245 = vmatpush3.msra.mxu1 %v121_v5  ;;  %v119_v9 = vld [vmem:[%s408_s3 + $0x60] sm:$0xff]  ;;  %v113_v15 = vld [vmem:[%s408_s3 + $0x30] sm:$0xff]  ;;  %v112_v16 = vld [vmem:[%s408_s3 + $0x28] sm:$0xff] }
   0x6   :  { %236 = vmatpush3.msra.mxu0 %v22_v4  ;;  %246 = vmatprep.subr.mxu1 %v279_v0  ;;  %v115_v13 = vld [vmem:[%s408_s3 + $0x40] sm:$0xff]  ;;  %v110_v18 = vld [vmem:[%s408_s3 + $0x18] sm:$0xff]  ;;  %v109_v19 = vld [vmem:[%s408_s3 + $0x10] sm:$0xff] }
   0x7   :  { %237 = vmatprep.subr.mxu0 %v279_v0  ;;  %247 = vmatpush3.msra.mxu1 %v120_v6  ;;  %v111_v17 = vld [vmem:[%s408_s3 + $0x20] sm:$0xff]  ;;  %v108_v20 = vld [vmem:[%s408_s3 + $0x8] sm:$0xff] }
   0x8   :  { %238 = vmatpush3.msra.mxu0 %v21_v7  ;;  %248 = vmatprep.subr.mxu1 %v279_v0  ;;  %v107_v21 = vld [vmem:[%s408_s3] sm:$0xff] }
   0x9   :  { %240 = vmatmul.mubr.msk.f32.vlgmr.msra.gmra.mxu0 %vm32_vm1, %v20_v8  ;;  %249 = vmatpush3.msra.mxu1 %v119_v9  ;;  %v206_v22 = vld [vmem:[%s410_s2] ss:$0 sm:$0xff] }
   0xa   :  { %250 = vmatprep.subr.mxu1 %v279_v0  ;;  %274 = vmatprep.mubr.msk.f32.mxu1 %vm280_vm0, %v279_v0  ;;  %v208_v27 = vld [vmem:[%s411_s4] ss:$0 sm:$0xff] }
   0xb   :  { %251 = vmatpush3.msra.mxu1 %v118_v10 }
   0xc   :  { %252 = vmatprep.subr.mxu1 %v279_v0 }
   0xd   :  { %253 = vmatpush3.msra.mxu1 %v117_v11 }
   0xe   :  { %254 = vmatprep.subr.mxu1 %v279_v0 }
   0xf   :  { %255 = vmatpush3.msra.mxu1 %v116_v12 }
  0x10   :  { %256 = vmatprep.subr.mxu1 %v279_v0 }
  0x11   :  { %257 = vmatpush3.msra.mxu1 %v115_v13 }
  0x12   :  { %258 = vmatprep.subr.mxu1 %v279_v0 }
  0x13   :  { %259 = vmatpush3.msra.mxu1 %v114_v14 }
  0x14   :  { %260 = vmatprep.subr.mxu1 %v279_v0 }
  0x15   :  { %261 = vmatpush3.msra.mxu1 %v113_v15 }
  0x16   :  { %262 = vmatprep.subr.mxu1 %v279_v0 }
  0x17   :  { %263 = vmatpush3.msra.mxu1 %v112_v16 }
  0x18   :  { %264 = vmatprep.subr.mxu1 %v279_v0 }
  0x19   :  { %265 = vmatpush3.msra.mxu1 %v111_v17 }
  0x1a   :  { %266 = vmatprep.subr.mxu1 %v279_v0 }
  0x1b   :  { %267 = vmatpush3.msra.mxu1 %v110_v18 }
  0x1c   :  { %268 = vmatprep.subr.mxu1 %v279_v0 }
  0x1d   :  { %269 = vmatpush3.msra.mxu1 %v109_v19 }
  0x1e   :  { %270 = vmatprep.subr.mxu1 %v279_v0 }
  0x1f   :  { %271 = vmatpush3.msra.mxu1 %v108_v20 }
  0x20   :  { %272 = vmatprep.subr.mxu1 %v279_v0 }
  0x21   :  { %273 = vmatpush3.msra.mxu1 %v107_v21 }
  0xc9   :  { %v102_v23 = vpop.f32.mrf.mxu0 }
  0xca   :  { %v103_v24 = vadd.f32 %v206_v22, %v102_v23 }
  0xcb   :  { %v241_v25 = vpop.f32.mrf.mxu0 }
  0xcc   :  { %v106_v26 = vmax.f32 %v103_v24, 0.0 }
  0xce   :  { %275 = vmatmul.mubr.f32.vlgmr.msra.gmra.mxu1 %v106_v26 }
 0x18e   :  { %v196_v28 = vpop.f32.mrf.mxu1 }
 0x18f   :  { %v197_v29 = vadd.f32 %v208_v27, %v196_v28 }
 0x190   :  { %v276_v30 = vpop.f32.mrf.mxu1 }
 0x191   :  { %201 = vst.msk [vmem:[%s412_s5] sm:$0xff] %vm200_vm2, %v197_v29 }

</bundles_post_ra>
